<compile_context>
chip_gen: v7x
topology: tpu7x:2x2x1
jax: 0.10.0
libtpu: 0.0.40
codegen_flags: <defaults>
</compile_context>

<pallas_src>
import jax
import jax.numpy as jnp
from jax import lax
from jax.experimental import pallas as pl
from jax.experimental.pallas import tpu as pltpu


def trbn_kernel(x_ref, params_ref, o_ref):
    # params rows: 0=scale, 1=shift, 2=upper bound, 3=lower bound (4..7 pad).
    x = x_ref[...].astype(jnp.float32)
    scale = params_ref[0:1, :]
    shift = params_ref[1:2, :]
    ub = params_ref[2:3, :]
    lb = params_ref[3:4, :]

    y = x * scale + shift
    # Two sequential selects, exactly mirroring the PyTorch torch.where pair
    # (also matches its behavior when weight < 0 and ub < lb).
    y = jnp.where(y < ub, y, ub)
    y = jnp.where(y > lb, y, lb)
    o_ref[...] = y.astype(o_ref.dtype)


def trbn_forward(x, gamma, beta, running_mean, running_var, *, lam, start_dim,
                 eps=1e-5, tm_max=512, tn_max=2048):
    """x: [B, C]; gamma/beta/running_mean/running_var: [C]. Returns [B, C]."""
    assert x.ndim == 2
    B, C = x.shape
    out_dtype = x.dtype

    # Legal tile caps: sublane multiple of 8, lane multiple of 128.
    tm_max = max(8, (tm_max // 8) * 8)
    tn_max = max(128, (tn_max // 128) * 128)

    f32 = jnp.float32
    gamma = gamma.astype(f32)
    beta = beta.astype(f32)
    running_mean = running_mean.astype(f32)
    running_var = running_var.astype(f32)

    # Fold eval-mode BN into per-channel scale/shift (tiny, done once in JAX).
    scale = gamma * lax.rsqrt(running_var + eps)
    shift = beta - running_mean * scale
    ub = gamma * lam + beta
    lb = -gamma * lam + beta

    # Fold the start_dim pass-through into the bounds: channels < start_dim
    # get +/-inf bounds, so the clamps are no-ops for them.
    ch = jnp.arange(C)
    ub = jnp.where(ch >= start_dim, ub, jnp.float32(jnp.inf))
    lb = jnp.where(ch >= start_dim, lb, jnp.float32(-jnp.inf))

    # Pad channels to a multiple of 128 so output stores are lane-dense.
    C_pad = ((C + 127) // 128) * 128
    pad_c = C_pad - C
    if pad_c:
        x_p = jnp.pad(x, ((0, 0), (0, pad_c)))
        scale = jnp.pad(scale, (0, pad_c), constant_values=1.0)
        shift = jnp.pad(shift, (0, pad_c))
        ub = jnp.pad(ub, (0, pad_c), constant_values=jnp.inf)
        lb = jnp.pad(lb, (0, pad_c), constant_values=-jnp.inf)
    else:
        x_p = x

    # Stack all per-channel vectors into one sublane-aligned (8, C_pad) array.
    params = jnp.zeros((8, C_pad), f32)
    params = params.at[0].set(scale).at[1].set(shift).at[2].set(ub).at[3].set(lb)

    # Tile sizes: full dim when small (always legal), else (8,128)-aligned caps.
    tm = B if B <= tm_max else tm_max
    tn = C_pad if C_pad <= tn_max else tn_max
    grid = (pl.cdiv(B, tm), pl.cdiv(C_pad, tn))

    itemsize = jnp.dtype(out_dtype).itemsize
    cost = pl.CostEstimate(
        flops=6 * B * C_pad,                       # fma + 2 cmps + 2 selects
        transcendentals=0,
        bytes_accessed=2 * B * C_pad * itemsize + 8 * C_pad * 4,
    )

    out = pl.pallas_call(
        trbn_kernel,
        out_shape=jax.ShapeDtypeStruct((B, C_pad), out_dtype),
        grid=grid,
        in_specs=[
            pl.BlockSpec((tm, tn), lambda i, j: (i, j)),   # x tile (native dtype)
            pl.BlockSpec((8, tn), lambda i, j: (0, j)),    # stacked params
        ],
        out_specs=pl.BlockSpec((tm, tn), lambda i, j: (i, j)),
        compiler_params=pltpu.CompilerParams(
            dimension_semantics=("parallel", "parallel"),
            vmem_limit_bytes=32 << 20),
        cost_estimate=cost,
    )(x_p, params)

    return out if pad_c == 0 else out[:, :C]


if __name__ == "__main__":
    key = jax.random.PRNGKey(0)
    kx, kg, kb, km, kv = jax.random.split(key, 5)

    B, C = 8, 64          # small: batch=8, channels=64
    start_dim = 16
    lam = 2.0
    eps = 1e-5

    x = jax.random.normal(kx, (B, C), dtype=jnp.float32)
    gamma = jax.random.normal(kg, (C,), dtype=jnp.float32)          # bn.weight
    beta = jax.random.normal(kb, (C,), dtype=jnp.float32) * 0.5     # bn.bias
    running_mean = jax.random.normal(km, (C,), dtype=jnp.float32) * 0.1
    running_var = jax.random.uniform(kv, (C,), dtype=jnp.float32,
                                     minval=0.5, maxval=1.5)

    y = jax.block_until_ready(
        trbn_forward(x, gamma, beta, running_mean, running_var,
                     lam=lam, start_dim=start_dim, eps=eps))

    # Pure-JAX reference of the exact PyTorch forward (eval-mode BN).
    y_bn = (x - running_mean) / jnp.sqrt(running_var + eps) * gamma + beta
    ub = gamma * lam + beta
    lb = -gamma * lam + beta
    tail = y_bn[:, start_dim:]
    tail = jnp.where(tail < ub[start_dim:], tail, ub[start_dim:])
    tail = jnp.where(tail > lb[start_dim:], tail, lb[start_dim:])
    ref = jnp.concatenate([y_bn[:, :start_dim], tail], axis=1)

    assert y.shape == (B, C)
    assert y.dtype == x.dtype
    assert jnp.allclose(y, ref, rtol=1e-5, atol=1e-5)

    print("KERNEL_OK")
</pallas_src>

<mosaic_0001>
module attributes {stable_mosaic.version = 11 : i64} {
  func.func @trbn_kernel(%arg0: i32, %arg1: i32, %arg2: memref<8x128xf32, #tpu.memory_space<vmem>>, %arg3: memref<8x128xf32, #tpu.memory_space<vmem>>, %arg4: memref<8x128xf32, #tpu.memory_space<vmem>>) attributes {dimension_semantics = [#tpu.dimension_semantics<parallel>, #tpu.dimension_semantics<parallel>], iteration_bounds = array<i64: 1, 1>, scalar_prefetch = 0 : i64, scratch_operands = 0 : i64, tpu.core_type = #tpu.core_type<tc>, window_params = [{transform_indices = @transform_0, window_bounds = array<i64: 8, 128>}, {transform_indices = @transform_1, window_bounds = array<i64: 8, 128>}, {transform_indices = @transform_2, window_bounds = array<i64: 8, 128>}]} {
    %c0 = arith.constant 0 : index
    %c0_0 = arith.constant 0 : index
    %0 = vector.load %arg2[%c0, %c0_0] : memref<8x128xf32, #tpu.memory_space<vmem>>, vector<8x128xf32>
    %c0_1 = arith.constant 0 : index
    %c0_2 = arith.constant 0 : index
    %1 = vector.load %arg3[%c0_1, %c0_2] : memref<8x128xf32, #tpu.memory_space<vmem>>, vector<1x128xf32>
    %c1 = arith.constant 1 : index
    %c0_3 = arith.constant 0 : index
    %2 = vector.load %arg3[%c1, %c0_3] : memref<8x128xf32, #tpu.memory_space<vmem>>, vector<1x128xf32>
    %c2 = arith.constant 2 : index
    %c0_4 = arith.constant 0 : index
    %3 = vector.load %arg3[%c2, %c0_4] : memref<8x128xf32, #tpu.memory_space<vmem>>, vector<1x128xf32>
    %c3 = arith.constant 3 : index
    %c0_5 = arith.constant 0 : index
    %4 = vector.load %arg3[%c3, %c0_5] : memref<8x128xf32, #tpu.memory_space<vmem>>, vector<1x128xf32>
    %5 = vector.broadcast %1 : vector<1x128xf32> to vector<8x128xf32>
    %6 = arith.mulf %0, %5 : vector<8x128xf32>
    %7 = vector.broadcast %2 : vector<1x128xf32> to vector<8x128xf32>
    %8 = arith.addf %6, %7 : vector<8x128xf32>
    %9 = vector.broadcast %3 : vector<1x128xf32> to vector<8x128xf32>
    %10 = arith.cmpf olt, %8, %9 : vector<8x128xf32>
    %11 = vector.shape_cast %3 : vector<1x128xf32> to vector<1x128xf32>
    %12 = vector.broadcast %11 : vector<1x128xf32> to vector<8x128xf32>
    %13 = arith.select %10, %8, %12 : vector<8x128xi1>, vector<8x128xf32>
    %14 = vector.broadcast %4 : vector<1x128xf32> to vector<8x128xf32>
    %15 = arith.cmpf ogt, %13, %14 : vector<8x128xf32>
    %16 = vector.shape_cast %4 : vector<1x128xf32> to vector<1x128xf32>
    %17 = vector.broadcast %16 : vector<1x128xf32> to vector<8x128xf32>
    %18 = arith.select %15, %13, %17 : vector<8x128xi1>, vector<8x128xf32>
    %c0_6 = arith.constant 0 : index
    %c0_7 = arith.constant 0 : index
    %19 = vector.load %arg4[%c0_6, %c0_7] : memref<8x128xf32, #tpu.memory_space<vmem>>, vector<8x128xf32>
    tpu.vector_store %arg4[%c0_6, %c0_7], %18 {strides = array<i32>} : memref<8x128xf32, #tpu.memory_space<vmem>>, vector<8x128xf32>,
    return
  }
  func.func @transform_0(%arg0: i32, %arg1: i32) -> (i32, i32) {
    %c0_i32 = arith.constant 0 : i32
    return %arg0, %arg1 : i32, i32
  }
  func.func @transform_1(%arg0: i32, %arg1: i32) -> (i32, i32) {
    %c0_i32 = arith.constant 0 : i32
    %c0_i32_0 = arith.constant 0 : i32
    return %c0_i32, %arg1 : i32, i32
  }
  func.func @transform_2(%arg0: i32, %arg1: i32) -> (i32, i32) {
    %c0_i32 = arith.constant 0 : i32
    return %arg0, %arg1 : i32, i32
  }
}

</mosaic_0001>

<bundles_post_ra>
// kernel: tpu_custom_call.1
= control target key start
LH: loop header
LB: loop body
LE: loop exit
PB: predicated region body
PF: predicated region fallthrough
CT: control target
= control target key end

     0   :  { %7 = vsyncpa [#allocation3], 0  ;;  %s213_s0 = inlined_call_operand.hbm [shape: f32[8,128], index: 0, kind: input, shape index: {}]   ;;  %s214_s1 = inlined_call_operand.hbm [shape: f32[8,128], index: 1, kind: input, shape index: {}]   ;;  %s215_s2 = inlined_call_operand.hbm [shape: f32[8,128], index: 2, kind: output, shape index: {}]  }
   0x1   :  { %8 = vsyncpa [#allocation6], 0 }
   0x2   :  { %9 = vsyncpa [#allocation4], 0  ;;  %s159_s9 = smov [#allocation2]   ;;  %s160_s11 = smov [#allocation5]  }
   0x3   :  { %s16_s10 = sshll.u32 %s159_s9, 4  ;;  %s26_s12 = sshll.u32 %s160_s11, 4  ;;  %s17_s10 = int_to_ptr.vmem [resolvable:$true] %s16_s10  ;;  %s27_s12 = int_to_ptr.vmem [resolvable:$true] %s26_s12 }
   0x4   :  { %s87_s15 = scalar_lea.hbm %s213_s0, 128 }
   0x5   :  { %p88_p0 = scmp.ne.s32.totalorder %s213_s0, %s87_s15  ;;  %p91_p1 = scmp.lt.u32.totalorder %s87_s15, %s213_s0 }
   0x7   :  { %p93_p2 = pnand %p91_p1, %p88_p0 }
   0x9   :  { %96 = shalt.err (!%p93_p2)
}
   0xa   :  { %s97_s20 = scalar_lea.vmem %s17_s10, 128  ;;  %p102_p4 = scmp.lt.s32.totalorder %s17_s10, %s17_s10 }
   0xb   :  { %p98_p3 = scmp.ne.s32.totalorder %s17_s10, %s97_s20  ;;  %p103_p5 = scmp.lt.s32.totalorder %s97_s20, %s97_s20 }
   0xd   :  { %p104_p6 = por %p103_p5, %p102_p4 }
   0xf   :  { %p105_p7 = pnand %p104_p6, %p98_p3 }
  0x11   :  { %108 = shalt.err (!%p105_p7)
}
  0x12   :  { %19 = dma.hbm_to_vmem [thread:$0]  %s213_s0, 128, %s17_s10, [#allocation3]  }
  0x13   :  { %s109_s25 = scalar_lea.hbm %s214_s1, 128 }
  0x14   :  { %p110_p8 = scmp.ne.s32.totalorder %s214_s1, %s109_s25  ;;  %p113_p9 = scmp.lt.u32.totalorder %s109_s25, %s214_s1 }
  0x16   :  { %p115_p10 = pnand %p113_p9, %p110_p8 }
  0x18   :  { %118 = shalt.err (!%p115_p10)
}
  0x19   :  { %s119_s30 = scalar_lea.vmem %s27_s12, 128  ;;  %p124_p12 = scmp.lt.s32.totalorder %s27_s12, %s27_s12 }
  0x1a   :  { %p120_p11 = scmp.ne.s32.totalorder %s27_s12, %s119_s30  ;;  %p125_p13 = scmp.lt.s32.totalorder %s119_s30, %s119_s30 }
  0x1c   :  { %p126_p0 = por %p125_p13, %p124_p12 }
  0x1e   :  { %p127_p1 = pnand %p126_p0, %p120_p11 }
  0x20   :  { %130 = shalt.err (!%p127_p1)
}
  0x21   :  { %29 = dma.hbm_to_vmem [thread:$0]  %s214_s1, 128, %s27_s12, [#allocation6]  }
  0x22   :  { %153 = dma.done.wait [#allocation3], 128  }
  0x23   :  { %154 = vsyncadd [#allocation3], 4294967168 }
  0x24   :  { %155 = dma.done.wait [#allocation6], 128  }
  0x25   :  { %156 = vsyncadd [#allocation6], 4294967168  ;;  %v36_v0 = vld [vmem:[#allocation2] sm:$0xff]  ;;  %v80_v1 = vld [vmem:[#allocation5] ss:$0 sm:$0xff]  ;;  %s161_s4 = smov [#allocation7]  }
  0x26   :  { %v81_v2 = vld [vmem:[#allocation5 + $0x1] ss:$0 sm:$0xff]  ;;  %v45_v3 = vmul.f32 %v80_v1, %v36_v0  ;;  %v82_v4 = vld [vmem:[#allocation5 + $0x2] ss:$0 sm:$0xff]  ;;  %v83_v6 = vld [vmem:[#allocation5 + $0x3] ss:$0 sm:$0xff] }
  0x27   :  { %s70_s5 = sshll.u32 %s161_s4, 4  ;;  %s71_s5 = int_to_ptr.vmem [resolvable:$true] %s70_s5 }
  0x28   :  { %v50_v5 = vadd.f32 %v81_v2, %v45_v3  ;;  %s131_s1 = scalar_lea.vmem %s71_s5, 128  ;;  %p136_p3 = scmp.lt.s32.totalorder %s71_s5, %s71_s5 }
  0x29   :  { %p132_p2 = scmp.ne.s32.totalorder %s71_s5, %s131_s1  ;;  %p137_p4 = scmp.lt.s32.totalorder %s131_s1, %s131_s1 }
  0x2a   :  { %vm55_vm0 = vcmp.lt.f32.partialorder %v50_v5, %v82_v4 }
  0x2b   :  { %v56_v7 = vsel %vm55_vm0, %v50_v5, %v82_v4  ;;  %p138_p5 = por %p137_p4, %p136_p3 }
  0x2c   :  { %vm61_vm1 = vcmp.gt.f32.partialorder %v56_v7, %v83_v6 }
  0x2d   :  { %v62_v8 = vsel %vm61_vm1, %v56_v7, %v83_v6  ;;  %p139_p6 = pnand %p138_p5, %p132_p2 }
  0x2e   :  { %63 = vst [vmem:[#allocation7] sm:$0xff] %v62_v8 }
  0x2f   :  { %142 = shalt.err (!%p139_p6)
}
  0x30   :  { %s143_s8 = scalar_lea.hbm %s215_s2, 128 }
  0x31   :  { %p144_p7 = scmp.ne.s32.totalorder %s215_s2, %s143_s8  ;;  %p147_p8 = scmp.lt.u32.totalorder %s143_s8, %s215_s2 }
  0x33   :  { %p149_p9 = pnand %p147_p8, %p144_p7 }
  0x35   :  { %152 = shalt.err (!%p149_p9)
}
  0x36   :  { %73 = dma.vmem_to_hbm [thread:$0]  %s71_s5, 128, %s215_s2, [#allocation4]  }
  0x37   :  { %157 = dma.done.wait [#allocation4], 128  }
  0x38   :  { %158 = vsyncadd [#allocation4], 4294967168 }
  0x39   :  { %77 = vsyncpa [#allocation3], 1 }
  0x3a   :  { %78 = vsyncpa [#allocation6], 1 }
  0x3b   :  { %79 = vsyncpa [#allocation4], 1 }

</bundles_post_ra>
